<compile_context>
chip_gen: v5e
topology: v5e:2x2
jax: 0.10.0
libtpu: 0.0.40
codegen_flags: <defaults>
</compile_context>

<pallas_src>
import jax
import jax.numpy as jnp
from jax.experimental import pallas as pl
from jax.experimental.pallas import tpu as pltpu


def _bmm_kernel(x_ref, y_ref, o_ref, acc_ref):
    # x_ref: (tm, tk), y_ref: (tk, tn), o_ref: (tm, tn), acc_ref: (tm, tn) f32.
    k = pl.program_id(3)

    @pl.when(k == 0)
    def _init():
        acc_ref[...] = jnp.zeros_like(acc_ref)

    acc_ref[...] += jnp.dot(
        x_ref[...], y_ref[...], preferred_element_type=jnp.float32
    )

    @pl.when(k == pl.num_programs(3) - 1)
    def _finalize():
        o_ref[...] = acc_ref[...].astype(o_ref.dtype)


def _round_up(a: int, b: int) -> int:
    return ((a + b - 1) // b) * b


def bmm(x, y, *, tm: int = 256, tn: int = 256, tk: int = 256):
    """Batched matmul: (B, M, K) @ (B, K, N) -> (B, M, N) (== torch.bmm)."""
    B, M, K = x.shape
    B2, K2, N = y.shape
    assert B == B2 and K == K2, "shape mismatch for bmm"
    out_dtype = jnp.result_type(x.dtype, y.dtype)

    # Shrink tiles for small problems while keeping sublane (8) / lane (128)
    # alignment so every block satisfies the (8, 128) divisibility rule.
    tm = min(tm, _round_up(M, 8))
    tk = min(tk, _round_up(K, 128))
    tn = min(tn, _round_up(N, 128))

    Mp, Kp, Np = _round_up(M, tm), _round_up(K, tk), _round_up(N, tn)

    # Zero-pad so the grid divides evenly and the output lane dim is dense.
    if (Mp, Kp) != (M, K):
        x = jnp.pad(x, ((0, 0), (0, Mp - M), (0, Kp - K)))
    if (Kp, Np) != (K, N):
        y = jnp.pad(y, ((0, 0), (0, Kp - K), (0, Np - N)))

    grid = (B, Mp // tm, Np // tn, Kp // tk)

    flops = 2 * B * M * N * K
    bytes_accessed = (
        B * M * K * x.dtype.itemsize
        + B * K * N * y.dtype.itemsize
        + B * M * N * jnp.dtype(out_dtype).itemsize
    )

    out = pl.pallas_call(
        _bmm_kernel,
        out_shape=jax.ShapeDtypeStruct((B, Mp, Np), out_dtype),
        grid_spec=pltpu.PrefetchScalarGridSpec(
            num_scalar_prefetch=0,
            grid=grid,
            in_specs=[
                # Batch dim squeezed out of the kernel view (None block dim).
                pl.BlockSpec((None, tm, tk), lambda b, i, j, k: (b, i, k)),
                pl.BlockSpec((None, tk, tn), lambda b, i, j, k: (b, k, j)),
            ],
            out_specs=pl.BlockSpec((None, tm, tn), lambda b, i, j, k: (b, i, j)),
            scratch_shapes=[pltpu.VMEM((tm, tn), jnp.float32)],
        ),
        compiler_params=pltpu.CompilerParams(
            dimension_semantics=("parallel", "parallel", "parallel", "arbitrary"),
        ),
        cost_estimate=pl.CostEstimate(
            flops=flops, transcendentals=0, bytes_accessed=bytes_accessed
        ),
    )(x, y)

    if (Mp, Np) != (M, N):
        out = out[:, :M, :N]
    return out


def _rel_err(a, b):
    return float(jnp.linalg.norm(a - b) / jnp.linalg.norm(b))


if __name__ == "__main__":
    # Small deterministic inputs consistent with torch.bmm's signature.
    B, M, K, N = 2, 8, 32, 16
    kx, ky = jax.random.split(jax.random.PRNGKey(0))
    x = jax.random.normal(kx, (B, M, K), dtype=jnp.float32)
    y = jax.random.normal(ky, (B, K, N), dtype=jnp.float32)

    out = jax.block_until_ready(bmm(x, y))
    ref = jnp.einsum("bmk,bkn->bmn", x, y)
    assert out.shape == (B, M, N)
    assert _rel_err(out, ref) < 1e-2, _rel_err(out, ref)

    # A second shape that exercises padding in every dim and the K reduction
    # loop (Kp = 512 -> two K tiles accumulated into the f32 scratch).
    B, M, K, N = 2, 40, 300, 200
    kx, ky = jax.random.split(jax.random.PRNGKey(1))
    x = jax.random.normal(kx, (B, M, K), dtype=jnp.float32)
    y = jax.random.normal(ky, (B, K, N), dtype=jnp.float32)

    out = jax.block_until_ready(bmm(x, y))
    ref = jnp.einsum("bmk,bkn->bmn", x, y)
    assert out.shape == (B, M, N)
    assert _rel_err(out, ref) < 1e-2, _rel_err(out, ref)

    print("KERNEL_OK")
</pallas_src>

<mosaic_0001>
module attributes {stable_mosaic.version = 11 : i64} {
  func.func @_bmm_kernel(%arg0: i32, %arg1: i32, %arg2: i32, %arg3: i32, %arg4: memref<1x8x128xf32, #tpu.memory_space<vmem>>, %arg5: memref<1x128x128xf32, #tpu.memory_space<vmem>>, %arg6: memref<1x8x128xf32, #tpu.memory_space<vmem>>, %arg7: memref<8x128xf32, #tpu.memory_space<vmem>>) attributes {dimension_semantics = [#tpu.dimension_semantics<parallel>, #tpu.dimension_semantics<parallel>, #tpu.dimension_semantics<parallel>, #tpu.dimension_semantics<arbitrary>], iteration_bounds = array<i64: 2, 1, 1, 1>, scalar_prefetch = 0 : i64, scratch_operands = 1 : i64, tpu.core_type = #tpu.core_type<tc>, window_params = [{transform_indices = @transform_0, window_bounds = array<i64: 1, 8, 128>}, {transform_indices = @transform_1, window_bounds = array<i64: 1, 128, 128>}, {transform_indices = @transform_2, window_bounds = array<i64: 1, 8, 128>}]} {
    %c0_i32 = arith.constant 0 : i32
    %0 = arith.cmpi eq, %arg3, %c0_i32 : i32
    %1 = arith.extui %0 : i1 to i32
    %c0_i32_0 = arith.constant 0 : i32
    %2 = arith.cmpi ne, %1, %c0_i32_0 : i32
    scf.if %2 {
      %cst_12 = arith.constant 0.000000e+00 : f32
      %14 = vector.broadcast %cst_12 : f32 to vector<8x128xf32>
      %c0_13 = arith.constant 0 : index
      %c0_14 = arith.constant 0 : index
      %15 = vector.load %arg7[%c0_13, %c0_14] : memref<8x128xf32, #tpu.memory_space<vmem>>, vector<8x128xf32>
      tpu.vector_store %arg7[%c0_13, %c0_14], %14 {strides = array<i32>} : memref<8x128xf32, #tpu.memory_space<vmem>>, vector<8x128xf32>,
    } else {
    }
    %c0 = arith.constant 0 : index
    %c0_1 = arith.constant 0 : index
    %3 = vector.load %arg7[%c0, %c0_1] : memref<8x128xf32, #tpu.memory_space<vmem>>, vector<8x128xf32>
    %c0_2 = arith.constant 0 : index
    %c0_3 = arith.constant 0 : index
    %c0_4 = arith.constant 0 : index
    %4 = vector.load %arg4[%c0_2, %c0_3, %c0_4] : memref<1x8x128xf32, #tpu.memory_space<vmem>>, vector<1x8x128xf32>
    %5 = vector.shape_cast %4 : vector<1x8x128xf32> to vector<8x128xf32>
    %c0_5 = arith.constant 0 : index
    %c0_6 = arith.constant 0 : index
    %c0_7 = arith.constant 0 : index
    %6 = vector.load %arg5[%c0_5, %c0_6, %c0_7] : memref<1x128x128xf32, #tpu.memory_space<vmem>>, vector<1x128x128xf32>
    %7 = vector.shape_cast %6 : vector<1x128x128xf32> to vector<128x128xf32>
    %cst = arith.constant dense<0.000000e+00> : vector<8x128xf32>
    %8 = tpu.matmul %5, %7, %cst {dimension_numbers = #tpu.dot_dimension_numbers<[1], [0], [0], [1], [0, 0, 1, 1], [], []>} : vector<8x128xf32>, vector<128x128xf32>, vector<8x128xf32> -> vector<8x128xf32>
    %9 = arith.addf %3, %8 : vector<8x128xf32>
    %c0_8 = arith.constant 0 : index
    %c0_9 = arith.constant 0 : index
    %10 = vector.load %arg7[%c0_8, %c0_9] : memref<8x128xf32, #tpu.memory_space<vmem>>, vector<8x128xf32>
    tpu.vector_store %arg7[%c0_8, %c0_9], %9 {strides = array<i32>} : memref<8x128xf32, #tpu.memory_space<vmem>>, vector<8x128xf32>,
    %c0_i32_10 = arith.constant 0 : i32
    %11 = arith.cmpi eq, %arg3, %c0_i32_10 : i32
    %12 = arith.extui %11 : i1 to i32
    %c0_i32_11 = arith.constant 0 : i32
    %13 = arith.cmpi ne, %12, %c0_i32_11 : i32
    scf.if %13 {
      %c0_12 = arith.constant 0 : index
      %c0_13 = arith.constant 0 : index
      %14 = vector.load %arg7[%c0_12, %c0_13] : memref<8x128xf32, #tpu.memory_space<vmem>>, vector<8x128xf32>
      %c0_14 = arith.constant 0 : index
      %c0_15 = arith.constant 0 : index
      %c0_16 = arith.constant 0 : index
      %15 = vector.load %arg6[%c0_14, %c0_15, %c0_16] : memref<1x8x128xf32, #tpu.memory_space<vmem>>, vector<1x8x128xf32>
      %16 = vector.shape_cast %15 : vector<1x8x128xf32> to vector<8x128xf32>
      %17 = vector.shape_cast %14 : vector<8x128xf32> to vector<1x8x128xf32>
      tpu.vector_store %arg6[%c0_14, %c0_15, %c0_16], %17 {strides = array<i32>} : memref<1x8x128xf32, #tpu.memory_space<vmem>>, vector<1x8x128xf32>,
    } else {
    }
    return
  }
  func.func @transform_0(%arg0: i32, %arg1: i32, %arg2: i32, %arg3: i32) -> (i32, i32, i32) {
    %c0_i32 = arith.constant 0 : i32
    return %arg0, %arg1, %arg3 : i32, i32, i32
  }
  func.func @transform_1(%arg0: i32, %arg1: i32, %arg2: i32, %arg3: i32) -> (i32, i32, i32) {
    %c0_i32 = arith.constant 0 : i32
    return %arg0, %arg3, %arg2 : i32, i32, i32
  }
  func.func @transform_2(%arg0: i32, %arg1: i32, %arg2: i32, %arg3: i32) -> (i32, i32, i32) {
    %c0_i32 = arith.constant 0 : i32
    return %arg0, %arg1, %arg2 : i32, i32, i32
  }
}

</mosaic_0001>

<bundles_post_ra>
// kernel: tpu_custom_call.1
= control target key start
LH: loop header
LB: loop body
LE: loop exit
PB: predicated region body
PF: predicated region fallthrough
CT: control target
= control target key end

     0   :  { %7 = vsyncpa [#allocation4], 0  ;;  %s851_s0 = inlined_call_operand.hbm [shape: f32[2,8,128], index: 0, kind: input, shape index: {}]   ;;  %s852_s1 = inlined_call_operand.hbm [shape: f32[2,128,128], index: 1, kind: input, shape index: {}]   ;;  %s853_s2 = inlined_call_operand.hbm [shape: f32[2,8,128], index: 2, kind: output, shape index: {}]  }
   0x1   :  { %9 = vsyncpa [#allocation4 + $0x1], 0 }
   0x2   :  { %10 = vsyncpa [#allocation7], 0 }
   0x3   :  { %12 = vsyncpa [#allocation7 + $0x1], 0 }
   0x4   :  { %13 = vsyncpa [#allocation5], 0 }
   0x5   :  { %15 = vsyncpa [#allocation5 + $0x1], 0  ;;  %s682_s9 = smov 0   ;;  %s684_s10 = smov 0  }
   0x6   :  { %s686_s11 = smov 0   ;;  %s688_s12 = smov 0  }
   0x7   :  { %s690_s13 = smov 0   ;;  %s692_s14 = smov 0  }
   0x8 LB: > { %s430_s15 = sadd.s32 4294967295, %s663_s14   ;;  %s431_s16 = sadd.s32 4294967294, %s663_s14   ;;  %s663_s14 = sphi %s692_s14, %s21_s14   ;;  %s659_s13 = sphi %s690_s13, %s863_s13   ;;  %s655_s12 = sphi %s688_s12, %s862_s12   ;;  %s651_s11 = sphi %s686_s11, %s861_s11   ;;  %s647_s10 = sphi %s684_s10, %s860_s10   ;;  %s643_s9 = sphi %s682_s9, %s859_s9  }
   0x9   : > { %s47_s17 = sadd.s32 1, %s659_s13  ;;  %s58_s18 = sadd.s32 1, %s651_s11 }
   0xa   : > { %p49_p0 = scmp.ge.s32.totalorder %s47_s17, 2  ;;  %p65_p1 = scmp.ne.s32.totalorder %s651_s11, %s647_s10 }
   0xb   : > { %p66_p2 = scmp.eq.s32.totalorder %s663_s14, 0  ;;  %p71_p3 = scmp.ne.s32.totalorder %s647_s10, %s643_s9 }
   0xc   : > { %s865_s17 = smov (%p49_p0, %s47_s17), 0  ;;  %p72_p5 = scmp.eq.s32.totalorder %s430_s15, 0 }
   0xd   : > { %p723_p4 = por %p66_p2, %p65_p1  ;;  %s51_s20 = ssub.s32 %s659_s13, %s865_s17 }
   0xe   : > { %p129_p6 = scmp.eq.s32.totalorder %s430_s15, 1  ;;  %p56_p7 = scmp.eq.s32.totalorder %s51_s20, 0 }
   0xf   : > { %p729_p8 = por %p72_p5, %p71_p3  ;;  %p135_p10 = scmp.eq.s32.totalorder %s431_s16, 1 }
  0x10   : > { %p733_p9 = por %p129_p6, %p65_p1  ;;  %p433_p12 = scmp.ge.s32.totalorder %s663_s14, 2 }
  0x11   : > { %s738_s23 = scalar_select %p56_p7, %s651_s11, %s58_s18  }
  0x12   : > { %p740_p11 = por %p135_p10, %p71_p3  ;;  %p465_p13 = scmp.lt.s32.totalorder %s663_s14, 2 }
  0x13   : > { %s747_s25 = sand.u32 1, %s651_s11   ;;  %s435_s27 = sshll.u32 %s659_s13, 3 }
  0x14   : > { %s434_s26 = sshll.u32 %s747_s25, 3  ;;  %s165_s30 = scalar_lea.hbm %s851_s0, %s435_s27 }
  0x15   : > { %s159_s3 = scalar_lea.vmem [#allocation3], %s434_s26  ;;  %s167_s5 = sshll.u32 %s165_s30, 4  ;;  %s168_s5 = int_to_ptr.hbm [resolvable:$true] %s167_s5 }
  0x16   : > { %s169_s4 = sshll.u32 %s159_s3, 4  ;;  %p756_p0 = pnand %p465_p13, %p723_p4  ;;  %s170_s4 = int_to_ptr.vmem [resolvable:$true] %s169_s4 }
  0x17   : > { %p439_p1 = scmp.ge.s32.totalorder %s663_s14, 1  ;;  %p199_p2 = scmp.lt.s32.totalorder %s663_s14, 3 }
  0x18   : > { %s156_s7 = scalar_lea.sflag [#allocation4], %s747_s25  ;;  %s436_s8 = sshll.u32 %s747_s25, 7 }
  0x19   : > { %457 = dma.hbm_to_vmem [thread:$0]  (!%p756_p0), %s168_s5, 128, %s170_s4, %s156_s7  }
  0x1a   : > { %p200_p3 = pnand %p439_p1, %p199_p2  ;;  %s447_s15 = sshll.u32 %s659_s13, 7 }
  0x1b   : > { %s188_s20 = scalar_lea.hbm %s852_s1, %s447_s15  ;;  %s180_s26 = scalar_lea.vmem [#allocation6], %s436_s8 }
  0x1c   : > { %s191_s19 = sshll.u32 %s180_s26, 4  ;;  %s189_s27 = sshll.u32 %s188_s20, 4  ;;  %s192_s19 = int_to_ptr.vmem [resolvable:$true] %s191_s19  ;;  %s190_s27 = int_to_ptr.hbm [resolvable:$true] %s189_s27 }
  0x1d   : > { %s177_s28 = scalar_lea.sflag [#allocation7], %s747_s25  ;;  %s665_s29 = smov 128  }
  0x1e   : > { %s666_s30 = smov 8   ;;  %203 = sbr.rel (%p200_p3) target bundleno = 200 (0xc8), region = 28 }
  0x1f   : > { %460 = dma.hbm_to_vmem [thread:$0]  (!%p756_p0), %s190_s27, 2048, %s192_s19, %s177_s28, %s665_s29, %s665_s29, %s666_s30  }
  0x20   : > { %s774_s3 = sand.u32 (!%p200_p3), 1, %s647_s10  }
  0x21   : > { %s440_s4 = sshll.u32 (!%p200_p3), %s774_s3, 3  ;;  %s206_s5 = scalar_lea.sflag (!%p200_p3), [#allocation4], %s774_s3 }
  0x22   : > { %s780_s7 = scalar_lea.vmem (!%p200_p3), [#allocation3], %s440_s4 }
  0x23   : > { %630 = dma.done.wait (%p729_p8), %s206_s5, 128  }
  0x24   : > { %632 = vsyncadd (%p729_p8), %s206_s5, 4294967168  ;;  %s441_s25 = sshll.u32 %s774_s3, 7  ;;  %s216_s6 = scalar_lea.sflag [#allocation7], %s774_s3 }
  0x25   : > { %s788_s8 = scalar_lea.vmem [#allocation6], %s441_s25 }
  0x26   : > { %634 = dma.done.wait (%p729_p8), %s216_s6, 2048  }
  0x27   : > { %636 = vsyncadd (%p729_p8), %s216_s6, 4294965248  ;;  %v269_v0 = vld [vmem:[%s788_s8 + $0x78] sm:$0xff]  ;;  %v268_v1 = vld [vmem:[%s788_s8 + $0x70] sm:$0xff]  ;;  %s444_s21 = sshll.u32 %s655_s12, 3  ;;  %s245_s20 = scalar_lea.vmem [#allocation8], %s440_s4 }
  0x28   : > { %270 = vmatpush.msra.mxu0 %v269_v0  ;;  %v267_v2 = vld [vmem:[%s788_s8 + $0x68] sm:$0xff]  ;;  %v266_v3 = vld [vmem:[%s788_s8 + $0x60] sm:$0xff]  ;;  %v265_v4 = vld [vmem:[%s788_s8 + $0x58] sm:$0xff]  ;;  %s310_s18 = scalar_lea.hbm %s853_s2, %s444_s21  ;;  %s312_s26 = sshll.u32 %s245_s20, 4  ;;  %s313_s26 = int_to_ptr.vmem [resolvable:$true] %s312_s26 }
  0x29   : > { %v264_v5 = vld [vmem:[%s788_s8 + $0x50] sm:$0xff]  ;;  %v263_v6 = vld [vmem:[%s788_s8 + $0x48] sm:$0xff]  ;;  %v262_v7 = vld [vmem:[%s788_s8 + $0x40] sm:$0xff]  ;;  %s314_s19 = sshll.u32 %s310_s18, 4  ;;  %s298_s27 = scalar_lea.sflag [#allocation5], %s774_s3  ;;  %s315_s19 = int_to_ptr.hbm [resolvable:$true] %s314_s19 }
  0x2a   : > { %271 = vmatpush.msra.mxu0 %v268_v1  ;;  %v261_v8 = vld [vmem:[%s788_s8 + $0x38] sm:$0xff]  ;;  %v260_v9 = vld [vmem:[%s788_s8 + $0x30] sm:$0xff]  ;;  %v259_v10 = vld [vmem:[%s788_s8 + $0x28] sm:$0xff]  ;;  %s591_s28 = sshra.s32 %s315_s19, 4  ;;  %s597_s5 = scalar_lea.hbm %s853_s2, 16  ;;  %s592_s28 = int_to_ptr.hbm [resolvable:$true] %s591_s28 }
  0x2b   : > { %v258_v11 = vld [vmem:[%s788_s8 + $0x20] sm:$0xff]  ;;  %v257_v12 = vld [vmem:[%s788_s8 + $0x18] sm:$0xff]  ;;  %v256_v13 = vld [vmem:[%s788_s8 + $0x10] sm:$0xff]  ;;  %s593_s29 = scalar_lea.hbm %s592_s28, 8  ;;  %p598_p7 = scmp.lt.s32.totalorder %s592_s28, %s853_s2 }
  0x2c   : > { %272 = vmatpush.msra.mxu0 %v267_v2  ;;  %v255_v14 = vld [vmem:[%s788_s8 + $0x8] sm:$0xff]  ;;  %v254_v15 = vld [vmem:[%s788_s8] sm:$0xff]  ;;  %v253_v16 = vld [vmem:[%s780_s7] sm:$0xff]  ;;  %p594_p4 = scmp.ne.s32.totalorder %s592_s28, %s593_s29  ;;  %p599_p8 = scmp.lt.s32.totalorder %s597_s5, %s593_s29 }
  0x2e   : > { %273 = vmatpush.msra.mxu0 %v266_v3  ;;  %p595_p5 = pnand %p594_p4, %p733_p9  ;;  %p600_p10 = por %p599_p8, %p598_p7 }
  0x30   : > { %274 = vmatpush.msra.mxu0 %v265_v4  ;;  %p596_p6 = pneg %p595_p5 }
  0x32   : > { %275 = vmatpush.msra.mxu0 %v264_v5  ;;  %p601_p13 = pnand %p600_p10, %p596_p6 }
  0x34   : > { %276 = vmatpush.msra.mxu0 %v263_v6 }
  0x36   : > { %277 = vmatpush.msra.mxu0 %v262_v7 }
  0x38   : > { %278 = vmatpush.msra.mxu0 %v261_v8 }
  0x3a   : > { %279 = vmatpush.msra.mxu0 %v260_v9 }
  0x3c   : > { %280 = vmatpush.msra.mxu0 %v259_v10 }
  0x3e   : > { %281 = vmatpush.msra.mxu0 %v258_v11 }
  0x40   : > { %282 = vmatpush.msra.mxu0 %v257_v12 }
  0x42   : > { %283 = vmatpush.msra.mxu0 %v256_v13 }
  0x44   : > { %284 = vmatpush.msra.mxu0 %v255_v14 }
  0x46   : > { %285 = vmatpush.msra.mxu0 %v254_v15 }
  0x47   : > { %286 = vmatmul.f32.vlgmr.msra.gmra.mxu0 %v253_v16 }
  0xc4   : > { %v287_v17 = vpop.f32.mrf.mxu0 }
  0xc5   : > { %296 = vst [vmem:[%s245_s20] sm:$0xff] %v287_v17 }
  0xc6   : > { %604 = shalt.err (!%p601_p13)
}
  0xc7   : > { %452 = dma.vmem_to_hbm [thread:$0]  (%p733_p9), %s313_s26, 128, %s315_s19, %s298_s27  }
  0xc8 PF: > { %s326_s3 = sand.u32 1, %s643_s9   ;;  %p462_p0 = pnand %p433_p12, %p740_p11 }
  0xc9   : > { %s327_s25 = scalar_lea.sflag [#allocation5], %s326_s3 }
  0xca   : > { %p463_p1 = pneg %p462_p0 }
  0xcc   : > { %638 = dma.done.wait (%p463_p1), %s327_s25, 128  }
  0xcd   : > { %640 = vsyncadd (%p463_p1), %s327_s25, 4294967168  ;;  %s21_s14 = sadd.s32 1, %s663_s14   ;;  %s859_s9 = smov %s647_s10 }
  0xce   : > { %p18_p2 = scmp.ge.s32.totalorder %s21_s14, 4   ;;  %s860_s10 = smov %s651_s11 }
  0xcf   : > { %s861_s11 = smov %s738_s23  ;;  %s862_s12 = smov %s659_s13 }
  0xd0   : > { %s863_s13 = smov %s865_s17  ;;  %20 = sbr.rel (!%p18_p2) target bundleno = 8 (0x8), region = 94 }
  0xd5   :  { %333 = vsyncpa [#allocation4], 1 }
  0xd6   :  { %335 = vsyncpa [#allocation4 + $0x1], 1 }
  0xd7   :  { %336 = vsyncpa [#allocation7], 1 }
  0xd8   :  { %338 = vsyncpa [#allocation7 + $0x1], 1 }
  0xd9   :  { %339 = vsyncpa [#allocation5], 1 }
  0xda   :  { %341 = vsyncpa [#allocation5 + $0x1], 1 }

</bundles_post_ra>
